<compile_context>
chip_gen: v7x
topology: tpu7x:2x2x1
jax: 0.10.0
libtpu: 0.0.40
codegen_flags: <defaults>
</compile_context>

<pallas_src>
import functools

import jax
import jax.numpy as jnp
from jax.experimental import pallas as pl
from jax.experimental.pallas import tpu as pltpu


def _feature_kernel(patches_ref, w1_ref, b1_ref, w2_ref, b2_ref, out_ref,
                    pooled_ref, *, n_patches):
    # patches_ref: (tm, Dp)       bf16 im2col tile of the stride-P patch-embed conv
    # w1_ref:      (Dp, D_pad)    bf16 conv weights as matmul (zero-padded cols)
    # b1_ref:      (1, D_pad)     f32
    # w2_ref:      (D_pad, F_pad) f32 final linear (zero pad rows/cols)
    # b2_ref:      (1, F_pad)     f32
    # out_ref:     (bt, F_pad)    f32 lane-dense output slab for this batch group
    # pooled_ref:  (bt, D_pad)    f32 VMEM accumulator (segment sums * 1/N)
    k = pl.program_id(1)
    tm = patches_ref.shape[0]
    bt = pooled_ref.shape[0]

    @pl.when(k == 0)
    def _():
        pooled_ref[...] = jnp.zeros_like(pooled_ref)

    # Patch embed + ReLU on the MXU/VPU, f32 accumulation.
    h = jnp.dot(patches_ref[...], w1_ref[...], preferred_element_type=jnp.float32)
    h = jnp.maximum(h + b1_ref[...], 0.0)  # (tm, D_pad)

    # In-kernel segment-mean tile: pool[b, c] = 1/N iff global-in-group row
    # (k*tm + c) belongs to local batch b, i.e. b*N <= row < (b+1)*N.
    # Built from iota + mul/cmp only (no integer division).
    row = k * tm + jax.lax.broadcasted_iota(jnp.int32, (bt, tm), 1)
    lo = jax.lax.broadcasted_iota(jnp.int32, (bt, tm), 0) * n_patches
    pool_tile = ((row >= lo) & (row < lo + n_patches)).astype(jnp.float32)
    pool_tile = pool_tile * (1.0 / n_patches)

    pooled_ref[...] += jnp.dot(pool_tile, h, preferred_element_type=jnp.float32)

    @pl.when(k == pl.num_programs(1) - 1)
    def _():
        f = jnp.dot(pooled_ref[...], w2_ref[...], preferred_element_type=jnp.float32)
        out_ref[...] = (f + b2_ref[...]).astype(out_ref.dtype)


def _pick_tile(rows, sub=8, target=512):
    """Largest multiple-of-8 divisor of `rows` that is <= target (else rows)."""
    best = None
    for t in range(sub, min(rows, target) + 1, sub):
        if rows % t == 0:
            best = t
    return best if best is not None else rows


def extract_features(images, w1, b1, w2, b2, *, patch=4):
    """images: [B, C, H, W] float32 (NCHW, matching PyTorch)."""
    B, C, H, W = images.shape
    P = patch
    assert H % P == 0 and W % P == 0
    nh, nw = H // P, W // P
    N = nh * nw
    M = B * N
    Dp = C * P * P
    D = w1.shape[1]
    F = w2.shape[1]

    LANE, SUB = 128, 8
    # TODO(synk): prefer 256-multiples here at real model sizes (v6e/v7x MXU width).
    D_pad = ((D + LANE - 1) // LANE) * LANE
    F_pad = ((F + LANE - 1) // LANE) * LANE

    # Glue: im2col of the stride-P conv, channel-major flatten matching the
    # torch Conv2d weight layout (out, in, kh, kw) flattened as in*kh*kw.
    # TODO(synk): at ViT scale fold this rearrange into the kernel's BlockSpec
    # to avoid the extra HBM round trip of the activation copy.
    patches = images.reshape(B, C, nh, P, nw, P)
    patches = jnp.transpose(patches, (0, 2, 4, 1, 3, 5)).reshape(M, Dp)
    patches = patches.astype(jnp.bfloat16)  # halve HBM bytes on dominant stream

    # Pad embed dim D -> D_pad (lane occupancy); K (Dp) is NOT padded in HBM.
    w1_pad = jnp.zeros((Dp, D_pad), jnp.bfloat16).at[:, :D].set(w1.astype(jnp.bfloat16))
    b1_pad = jnp.zeros((1, D_pad), jnp.float32).at[:, :D].set(b1.reshape(1, D))
    w2_pad = jnp.zeros((D_pad, F_pad), jnp.float32).at[:D, :F].set(w2)
    b2_pad = jnp.zeros((1, F_pad), jnp.float32).at[:, :F].set(b2.reshape(1, F))

    # Batch groups for the parallel grid axis (v7x: 2 TensorCores).
    bt = SUB if B % SUB == 0 else B
    G = B // bt
    rows_per_group = bt * N
    tm = _pick_tile(rows_per_group, SUB)
    steps = rows_per_group // tm

    out_pad = pl.pallas_call(
        functools.partial(_feature_kernel, n_patches=N),
        out_shape=jax.ShapeDtypeStruct((B, F_pad), jnp.float32),
        grid_spec=pltpu.PrefetchScalarGridSpec(
            num_scalar_prefetch=0,
            grid=(G, steps),
            in_specs=[
                # Patch tiles stream; full (unpadded) Dp as the last dim.
                pl.BlockSpec((tm, Dp), lambda j, k: (j * steps + k, 0)),
                # Weights/biases: constant index maps -> stay VMEM-resident.
                pl.BlockSpec((Dp, D_pad), lambda j, k: (0, 0)),
                pl.BlockSpec((1, D_pad), lambda j, k: (0, 0)),
                pl.BlockSpec((D_pad, F_pad), lambda j, k: (0, 0)),
                pl.BlockSpec((1, F_pad), lambda j, k: (0, 0)),
            ],
            out_specs=pl.BlockSpec((bt, F_pad), lambda j, k: (j, 0)),
            scratch_shapes=[pltpu.VMEM((bt, D_pad), jnp.float32)],
        ),
        compiler_params=pltpu.CompilerParams(
            dimension_semantics=("parallel", "arbitrary"),
            vmem_limit_bytes=32 * 1024 * 1024,
        ),
    )(patches, w1_pad, b1_pad, w2_pad, b2_pad)

    return out_pad[:, :F]


def reference_features(images, w1, b1, w2, b2, *, patch=4):
    B, C, H, W = images.shape
    P = patch
    nh, nw = H // P, W // P
    patches = images.reshape(B, C, nh, P, nw, P)
    patches = jnp.transpose(patches, (0, 2, 4, 1, 3, 5)).reshape(B, nh * nw, C * P * P)
    h = jnp.maximum(patches @ w1 + b1, 0.0)
    pooled = h.mean(axis=1)
    return pooled @ w2 + b2


if __name__ == "__main__":
    # TODO(synk): the wrapped `model` is unspecified in the PyTorch source; a
    # deterministic synthetic patch-embed feature extractor is used instead.
    B, C, H, W = 2, 4, 16, 16
    P = 4
    D = 32   # embed dim
    F = 32   # feature dim
    Dp = C * P * P

    key = jax.random.PRNGKey(0)
    k_img, k_w1, k_b1, k_w2, k_b2 = jax.random.split(key, 5)
    images = jax.random.normal(k_img, (B, C, H, W), dtype=jnp.float32)
    w1 = jax.random.normal(k_w1, (Dp, D), dtype=jnp.float32) * 0.05
    b1 = jax.random.normal(k_b1, (D,), dtype=jnp.float32) * 0.05
    w2 = jax.random.normal(k_w2, (D, F), dtype=jnp.float32) * 0.05
    b2 = jax.random.normal(k_b2, (F,), dtype=jnp.float32) * 0.05

    feats = extract_features(images, w1, b1, w2, b2, patch=P)
    feats = jax.block_until_ready(feats)

    ref = reference_features(images, w1, b1, w2, b2, patch=P)
    assert feats.shape == (B, F)
    # Tolerance loosened vs the f32-only version: patch/conv-weight streams are
    # bf16 (f32 accumulation), per the performance review.
    assert jnp.allclose(feats, ref, atol=2e-2, rtol=2e-2)

    print("KERNEL_OK")
</pallas_src>

<mosaic_0001>
module attributes {stable_mosaic.version = 11 : i64} {
  func.func @_feature_kernel(%arg0: i32, %arg1: i32, %arg2: memref<32x64xbf16, #tpu.memory_space<vmem>>, %arg3: memref<64x128xbf16, #tpu.memory_space<vmem>>, %arg4: memref<1x128xf32, #tpu.memory_space<vmem>>, %arg5: memref<128x128xf32, #tpu.memory_space<vmem>>, %arg6: memref<1x128xf32, #tpu.memory_space<vmem>>, %arg7: memref<2x128xf32, #tpu.memory_space<vmem>>, %arg8: memref<2x128xf32, #tpu.memory_space<vmem>>) attributes {dimension_semantics = [#tpu.dimension_semantics<parallel>, #tpu.dimension_semantics<arbitrary>], iteration_bounds = array<i64: 1, 1>, scalar_prefetch = 0 : i64, scratch_operands = 1 : i64, tpu.core_type = #tpu.core_type<tc>, window_params = [{transform_indices = @transform_0, window_bounds = array<i64: 32, 64>}, {pipeline_mode = #tpu.pipeline_mode<synchronous>, transform_indices = @transform_1, window_bounds = array<i64: 64, 128>}, {pipeline_mode = #tpu.pipeline_mode<synchronous>, transform_indices = @transform_2, window_bounds = array<i64: 1, 128>}, {pipeline_mode = #tpu.pipeline_mode<synchronous>, transform_indices = @transform_3, window_bounds = array<i64: 128, 128>}, {pipeline_mode = #tpu.pipeline_mode<synchronous>, transform_indices = @transform_4, window_bounds = array<i64: 1, 128>}, {transform_indices = @transform_5, window_bounds = array<i64: 2, 128>}]} {
    %c0_i32 = arith.constant 0 : i32
    %0 = arith.cmpi eq, %arg1, %c0_i32 : i32
    %1 = arith.extui %0 : i1 to i32
    %c0_i32_0 = arith.constant 0 : i32
    %2 = arith.cmpi ne, %1, %c0_i32_0 : i32
    scf.if %2 {
      %cst_16 = arith.constant 0.000000e+00 : f32
      %34 = vector.broadcast %cst_16 : f32 to vector<2x128xf32>
      %c0_17 = arith.constant 0 : index
      %c0_18 = arith.constant 0 : index
      %35 = vector.load %arg8[%c0_17, %c0_18] : memref<2x128xf32, #tpu.memory_space<vmem>>, vector<2x128xf32>
      tpu.vector_store %arg8[%c0_17, %c0_18], %34 {strides = array<i32>} : memref<2x128xf32, #tpu.memory_space<vmem>>, vector<2x128xf32>,
    } else {
    }
    %c0 = arith.constant 0 : index
    %c0_1 = arith.constant 0 : index
    %3 = vector.load %arg2[%c0, %c0_1] : memref<32x64xbf16, #tpu.memory_space<vmem>>, vector<32x64xbf16>
    %c0_2 = arith.constant 0 : index
    %c0_3 = arith.constant 0 : index
    %4 = vector.load %arg3[%c0_2, %c0_3] : memref<64x128xbf16, #tpu.memory_space<vmem>>, vector<64x128xbf16>
    %cst = arith.constant dense<0.000000e+00> : vector<32x128xf32>
    %5 = tpu.matmul %3, %4, %cst {dimension_numbers = #tpu.dot_dimension_numbers<[1], [0], [0], [1], [0, 0, 1, 1], [], []>} : vector<32x64xbf16>, vector<64x128xbf16>, vector<32x128xf32> -> vector<32x128xf32>
    %c0_4 = arith.constant 0 : index
    %c0_5 = arith.constant 0 : index
    %6 = vector.load %arg4[%c0_4, %c0_5] : memref<1x128xf32, #tpu.memory_space<vmem>>, vector<1x128xf32>
    %7 = vector.broadcast %6 : vector<1x128xf32> to vector<32x128xf32>
    %8 = arith.addf %5, %7 : vector<32x128xf32>
    %cst_6 = arith.constant 0.000000e+00 : f32
    %9 = vector.broadcast %cst_6 : f32 to vector<32x128xf32>
    %10 = arith.maximumf %8, %9 : vector<32x128xf32>
    %c32_i32 = arith.constant 32 : i32
    %11 = arith.muli %arg1, %c32_i32 : i32
    %12 = tpu.iota {dimensions = array<i32: 1>} : vector<2x32xi32>
    %13 = vector.broadcast %11 : i32 to vector<2x32xi32>
    %14 = arith.addi %13, %12 : vector<2x32xi32>
    %15 = tpu.iota {dimensions = array<i32: 0>} : vector<2x32xi32>
    %c16_i32 = arith.constant 16 : i32
    %16 = vector.broadcast %c16_i32 : i32 to vector<2x32xi32>
    %17 = arith.muli %15, %16 : vector<2x32xi32>
    %18 = arith.cmpi sge, %14, %17 : vector<2x32xi32>
    %c16_i32_7 = arith.constant 16 : i32
    %19 = vector.broadcast %c16_i32_7 : i32 to vector<2x32xi32>
    %20 = arith.addi %17, %19 : vector<2x32xi32>
    %21 = arith.cmpi slt, %14, %20 : vector<2x32xi32>
    %22 = arith.andi %18, %21 : vector<2x32xi1>
    %23 = arith.extui %22 : vector<2x32xi1> to vector<2x32xi32>
    %24 = arith.sitofp %23 : vector<2x32xi32> to vector<2x32xf32>
    %cst_8 = arith.constant 6.250000e-02 : f32
    %25 = vector.broadcast %cst_8 : f32 to vector<2x32xf32>
    %26 = arith.mulf %24, %25 : vector<2x32xf32>
    %c0_9 = arith.constant 0 : index
    %c0_10 = arith.constant 0 : index
    %27 = vector.load %arg8[%c0_9, %c0_10] : memref<2x128xf32, #tpu.memory_space<vmem>>, vector<2x128xf32>
    %cst_11 = arith.constant dense<0.000000e+00> : vector<2x128xf32>
    %28 = tpu.matmul %26, %10, %cst_11 {dimension_numbers = #tpu.dot_dimension_numbers<[1], [0], [0], [1], [0, 0, 1, 1], [], []>} : vector<2x32xf32>, vector<32x128xf32>, vector<2x128xf32> -> vector<2x128xf32>
    %29 = arith.addf %27, %28 : vector<2x128xf32>
    %c0_12 = arith.constant 0 : index
    %c0_13 = arith.constant 0 : index
    %30 = vector.load %arg8[%c0_12, %c0_13] : memref<2x128xf32, #tpu.memory_space<vmem>>, vector<2x128xf32>
    tpu.vector_store %arg8[%c0_12, %c0_13], %29 {strides = array<i32>} : memref<2x128xf32, #tpu.memory_space<vmem>>, vector<2x128xf32>,
    %c0_i32_14 = arith.constant 0 : i32
    %31 = arith.cmpi eq, %arg1, %c0_i32_14 : i32
    %32 = arith.extui %31 : i1 to i32
    %c0_i32_15 = arith.constant 0 : i32
    %33 = arith.cmpi ne, %32, %c0_i32_15 : i32
    scf.if %33 {
      %c0_16 = arith.constant 0 : index
      %c0_17 = arith.constant 0 : index
      %34 = vector.load %arg8[%c0_16, %c0_17] : memref<2x128xf32, #tpu.memory_space<vmem>>, vector<2x128xf32>
      %c0_18 = arith.constant 0 : index
      %c0_19 = arith.constant 0 : index
      %35 = vector.load %arg5[%c0_18, %c0_19] : memref<128x128xf32, #tpu.memory_space<vmem>>, vector<128x128xf32>
      %cst_20 = arith.constant dense<0.000000e+00> : vector<2x128xf32>
      %36 = tpu.matmul %34, %35, %cst_20 {dimension_numbers = #tpu.dot_dimension_numbers<[1], [0], [0], [1], [0, 0, 1, 1], [], []>} : vector<2x128xf32>, vector<128x128xf32>, vector<2x128xf32> -> vector<2x128xf32>
      %c0_21 = arith.constant 0 : index
      %c0_22 = arith.constant 0 : index
      %37 = vector.load %arg6[%c0_21, %c0_22] : memref<1x128xf32, #tpu.memory_space<vmem>>, vector<1x128xf32>
      %38 = vector.broadcast %37 : vector<1x128xf32> to vector<2x128xf32>
      %39 = arith.addf %36, %38 : vector<2x128xf32>
      %c0_23 = arith.constant 0 : index
      %c0_24 = arith.constant 0 : index
      %40 = vector.load %arg7[%c0_23, %c0_24] : memref<2x128xf32, #tpu.memory_space<vmem>>, vector<2x128xf32>
      tpu.vector_store %arg7[%c0_23, %c0_24], %39 {strides = array<i32>} : memref<2x128xf32, #tpu.memory_space<vmem>>, vector<2x128xf32>,
    } else {
    }
    return
  }
  func.func @transform_0(%arg0: i32, %arg1: i32) -> (i32, i32) {
    %c1_i32 = arith.constant 1 : i32
    %0 = arith.muli %arg0, %c1_i32 : i32
    %1 = arith.addi %0, %arg1 : i32
    %c0_i32 = arith.constant 0 : i32
    %c0_i32_0 = arith.constant 0 : i32
    return %1, %c0_i32 : i32, i32
  }
  func.func @transform_1(%arg0: i32, %arg1: i32) -> (i32, i32) {
    %c0_i32 = arith.constant 0 : i32
    %c0_i32_0 = arith.constant 0 : i32
    %c0_i32_1 = arith.constant 0 : i32
    return %c0_i32, %c0_i32_0 : i32, i32
  }
  func.func @transform_2(%arg0: i32, %arg1: i32) -> (i32, i32) {
    %c0_i32 = arith.constant 0 : i32
    %c0_i32_0 = arith.constant 0 : i32
    %c0_i32_1 = arith.constant 0 : i32
    return %c0_i32, %c0_i32_0 : i32, i32
  }
  func.func @transform_3(%arg0: i32, %arg1: i32) -> (i32, i32) {
    %c0_i32 = arith.constant 0 : i32
    %c0_i32_0 = arith.constant 0 : i32
    %c0_i32_1 = arith.constant 0 : i32
    return %c0_i32, %c0_i32_0 : i32, i32
  }
  func.func @transform_4(%arg0: i32, %arg1: i32) -> (i32, i32) {
    %c0_i32 = arith.constant 0 : i32
    %c0_i32_0 = arith.constant 0 : i32
    %c0_i32_1 = arith.constant 0 : i32
    return %c0_i32, %c0_i32_0 : i32, i32
  }
  func.func @transform_5(%arg0: i32, %arg1: i32) -> (i32, i32) {
    %c0_i32 = arith.constant 0 : i32
    %c0_i32_0 = arith.constant 0 : i32
    return %arg0, %c0_i32 : i32, i32
  }
}

</mosaic_0001>

<bundles_post_ra>
// kernel: tpu_custom_call.1
= control target key start
LH: loop header
LB: loop body
LE: loop exit
PB: predicated region body
PF: predicated region fallthrough
CT: control target
= control target key end

     0   :  { %10 = vsyncpa [#allocation4], 0  ;;  %s744_s0 = inlined_call_operand.hbm [shape: bf16[32,64], index: 0, kind: input, shape index: {}]   ;;  %s745_s1 = inlined_call_operand.hbm [shape: bf16[64,128], index: 1, kind: input, shape index: {}]   ;;  %s746_s2 = inlined_call_operand.vmem [shape: f32[1,128], index: 2, kind: input, shape index: {}]   ;;  %s747_s3 = inlined_call_operand.hbm [shape: f32[128,128], index: 3, kind: input, shape index: {}]   ;;  %s748_s4 = inlined_call_operand.vmem [shape: f32[1,128], index: 4, kind: input, shape index: {}]   ;;  %s749_s5 = inlined_call_operand.hbm [shape: f32[2,128], index: 5, kind: output, shape index: {}]  }
   0x1   :  { %11 = vsyncpa [#allocation7], 0 }
   0x2   :  { %12 = vsyncpa [#allocation5], 0  ;;  %s632_s18 = smov [#allocation6]   ;;  %s633_s20 = smov [#allocation3]  }
   0x3   :  { %s34_s19 = sshll.u32 %s632_s18, 4  ;;  %s22_s21 = sshll.u32 %s633_s20, 4  ;;  %s35_s19 = int_to_ptr.vmem [resolvable:$true] %s34_s19  ;;  %s673_s21 = int_to_ptr.vmem [resolvable:$true] %s22_s21 }
   0x4   :  { %s538_s24 = scalar_lea.hbm %s745_s1, 512 }
   0x5   :  { %p539_p0 = scmp.ne.s32.totalorder %s745_s1, %s538_s24  ;;  %p542_p1 = scmp.lt.u32.totalorder %s538_s24, %s745_s1 }
   0x7   :  { %p544_p2 = pnand %p542_p1, %p539_p0 }
   0x9   :  { %547 = shalt.err (!%p544_p2)
}
   0xa   :  { %s548_s29 = scalar_lea.vmem %s35_s19, 512  ;;  %p553_p4 = scmp.lt.s32.totalorder %s35_s19, %s35_s19 }
   0xb   :  { %p549_p3 = scmp.ne.s32.totalorder %s35_s19, %s548_s29  ;;  %p554_p5 = scmp.lt.s32.totalorder %s548_s29, %s548_s29 }
   0xd   :  { %p555_p6 = por %p554_p5, %p553_p4 }
   0xf   :  { %p556_p7 = pnand %p555_p6, %p549_p3 }
  0x11   :  { %559 = shalt.err (!%p556_p7)
}
  0x12   :  { %s634_s30 = smov 64   ;;  %s635_s6 = smov 4  }
  0x13   :  { %40 = dma.hbm_to_vmem [thread:$0]  %s745_s1, 512, %s35_s19, [#allocation7], %s634_s30, %s634_s30, %s635_s6  }
  0x14   :  { %s560_s11 = scalar_lea.hbm %s744_s0, 256 }
  0x15   :  { %p561_p8 = scmp.ne.s32.totalorder %s744_s0, %s560_s11  ;;  %p564_p9 = scmp.lt.u32.totalorder %s560_s11, %s744_s0 }
  0x17   :  { %p566_p10 = pnand %p564_p9, %p561_p8 }
  0x19   :  { %569 = shalt.err (!%p566_p10)
}
  0x1a   :  { %s570_s16 = scalar_lea.vmem %s673_s21, 256  ;;  %p575_p12 = scmp.lt.s32.totalorder %s673_s21, %s673_s21 }
  0x1b   :  { %p571_p11 = scmp.ne.s32.totalorder %s673_s21, %s570_s16  ;;  %p576_p13 = scmp.lt.s32.totalorder %s570_s16, %s570_s16 }
  0x1d   :  { %p577_p0 = por %p576_p13, %p575_p12 }
  0x1f   :  { %p578_p1 = pnand %p577_p0, %p571_p11 }
  0x21   :  { %581 = shalt.err (!%p578_p1)
}
  0x22   :  { %28 = dma.hbm_to_vmem [thread:$0]  %s744_s0, 256, %s673_s21, [#allocation4], %s634_s30, %s634_s30, %s635_s6  }
  0x23   :  { %s636_s18 = smov [#allocation8]   ;;  %s582_s23 = scalar_lea.hbm %s747_s3, 2048 }
  0x24   :  { %s48_s19 = sshll.u32 %s636_s18, 4  ;;  %p583_p2 = scmp.ne.s32.totalorder %s747_s3, %s582_s23  ;;  %s49_s19 = int_to_ptr.vmem [resolvable:$true] %s48_s19 }
  0x25   :  { %p586_p3 = scmp.lt.u32.totalorder %s582_s23, %s747_s3 }
  0x27   :  { %p588_p4 = pnand %p586_p3, %p583_p2 }
  0x29   :  { %591 = shalt.err (!%p588_p4)
}
  0x2a   :  { %s592_s28 = scalar_lea.vmem %s49_s19, 2048  ;;  %p597_p6 = scmp.lt.s32.totalorder %s49_s19, %s49_s19 }
  0x2b   :  { %p593_p5 = scmp.ne.s32.totalorder %s49_s19, %s592_s28  ;;  %p598_p7 = scmp.lt.s32.totalorder %s592_s28, %s592_s28 }
  0x2d   :  { %p599_p8 = por %p598_p7, %p597_p6 }
  0x2f   :  { %p600_p9 = pnand %p599_p8, %p593_p5 }
  0x31   :  { %603 = shalt.err (!%p600_p9)
}
  0x32   :  { %s637_s0 = smov 128   ;;  %s638_s21 = smov 8  }
  0x33   :  { %54 = dma.hbm_to_vmem [thread:$0]  %s747_s3, 2048, %s49_s19, [#allocation7], %s637_s0, %s637_s0, %s638_s21  }
  0x34   :  { %626 = dma.done.wait [#allocation4], 256  }
  0x35   :  { %627 = vsyncadd [#allocation4], 4294967040 }
  0x36   :  { %628 = dma.done.wait [#allocation7], 2560  }
  0x37   :  { %629 = vsyncadd [#allocation7], 4294964736  ;;  %v532_v0 = vld [vmem:[#allocation6] sm:$0xff]   ;;  %v533_v1 = vld [vmem:[#allocation6 + $0x8] sm:$0xff]   ;;  %vm127_vm0 = vcmask 523264   ;;  %v639_v6 = vmov 0.0|0.0   ;;  %v188_v23 = vlaneseq }
  0x38   :  { %433 = vmatprep.subr.bf16.mxu0 %v532_v0  ;;  %v534_v2 = vld [vmem:[#allocation6 + $0x10] sm:$0xff]   ;;  %v535_v4 = vld [vmem:[#allocation6 + $0x18] sm:$0xff]   ;;  %497 = vmatprep.subr.bf16.mxu1 %v639_v6  ;;  %v640_v7 = vmov 0.0   ;;  %vm641_vm1 = vmmov 0   ;;  %v283_v8 = vld [vmem:[#allocation8] sm:$0xff]  ;;  %vm203_vm5 = vcmask 261120  }
  0x39   :  { %434 = vmatpush3.bf16.msra.mxu0 %v532_v0  ;;  %v536_v3 = vld [vmem:[#allocation3] sm:$0xff]   ;;  %v537_v5 = vld [vmem:[#allocation3 + $0x8] sm:$0xff]   ;;  %73 = vst [vmem:[#allocation2] sm:$0x3] %v640_v7  ;;  %488 = vmatprep.mubr.msk.f32.mxu1 %vm641_vm1, %v640_v7  ;;  %v284_v9 = vld [vmem:[#allocation8 + $0x8] sm:$0xff]  ;;  %v193_v24 = vshrl.u32 %v188_v23, 7 }
  0x3a   :  { %435 = vmatprep.subr.bf16.mxu0 %v533_v1  ;;  %441 = vmatprep.mubr.msk.bf16.mxu0 %vm127_vm0, %v536_v3  ;;  %v285_v10 = vld [vmem:[#allocation8 + $0x10] sm:$0xff]  ;;  %v498_v11 = vpack.c.bf16 %v284_v9, %v283_v8  ;;  %v286_v12 = vld [vmem:[#allocation8 + $0x18] sm:$0xff]  ;;  %v287_v14 = vld [vmem:[#allocation8 + $0x20] sm:$0xff]  ;;  %v189_v28 = vand.u32 127, %v188_v23  ;;  %s642_s8 = smov [#allocation9]  }
  0x3b   :  { %v501_v13 = vpack.c.bf16 %v286_v12, %v285_v10  ;;  %v288_v15 = vld [vmem:[#allocation8 + $0x28] sm:$0xff]  ;;  %v289_v17 = vld [vmem:[#allocation8 + $0x30] sm:$0xff]  ;;  %v290_v18 = vld [vmem:[#allocation8 + $0x38] sm:$0xff]  ;;  %v194_v25 = vmul.u32 16, %v193_v24  ;;  %s383_s9 = sshll.u32 %s642_s8, 4  ;;  %s384_s9 = int_to_ptr.vmem [resolvable:$true] %s383_s9 }
  0x3c   :  { %499 = vmatpush3.bf16.msra.mxu1 %v498_v11  ;;  %v504_v16 = vpack.c.bf16 %v288_v15, %v287_v14  ;;  %v507_v19 = vpack.c.bf16 %v290_v18, %v289_v17  ;;  %v291_v20 = vld [vmem:[#allocation8 + $0x40] sm:$0xff]  ;;  %v292_v21 = vld [vmem:[#allocation8 + $0x48] sm:$0xff]  ;;  %v293_v45 = vld [vmem:[#allocation8 + $0x50] sm:$0xff]  ;;  %s604_s10 = scalar_lea.vmem %s384_s9, 32  ;;  %p609_p11 = scmp.lt.s32.totalorder %s384_s9, %s384_s9 }
  0x3d   :  { %436 = vmatpush3.bf16.msra.mxu0 %v533_v1  ;;  %500 = vmatprep.subr.bf16.mxu1 %v639_v6  ;;  %v510_v22 = vpack.c.bf16 %v292_v21, %v291_v20  ;;  %v393_v26 = vld [vmem:[%s746_s2] ss:$0 sm:$0xff]  ;;  %v196_v29 = vadd.s32 16, %v194_v25  ;;  %vm195_vm2 = vcmp.ge.s32.totalorder %v189_v28, %v194_v25  ;;  %v294_v46 = vld [vmem:[#allocation8 + $0x58] sm:$0xff]  ;;  %v295_v48 = vld [vmem:[#allocation8 + $0x60] sm:$0xff]  ;;  %p605_p10 = scmp.ne.s32.totalorder %s384_s9, %s604_s10  ;;  %p610_p12 = scmp.lt.s32.totalorder %s604_s10, %s604_s10 }
  0x3e   :  { %437 = vmatprep.subr.bf16.mxu0 %v534_v2  ;;  %v513_v47 = vpack.c.bf16 %v294_v46, %v293_v45  ;;  %v296_v49 = vld [vmem:[#allocation8 + $0x68] sm:$0xff]  ;;  %v297_v51 = vld [vmem:[#allocation8 + $0x70] sm:$0xff]  ;;  %v298_v52 = vld [vmem:[#allocation8 + $0x78] sm:$0xff] }
  0x3f   :  { %vm197_vm3 = vcmp.lt.s32.totalorder %v189_v28, %v196_v29  ;;  %v516_v50 = vpack.c.bf16 %v296_v49, %v295_v48  ;;  %v519_v53 = vpack.c.bf16 %v298_v52, %v297_v51  ;;  %v404_v59 = vld [vmem:[%s748_s4] ss:$0 sm:$0xff]  ;;  %p611_p13 = por %p610_p12, %p609_p11 }
  0x40   :  { %502 = vmatpush3.bf16.msra.mxu1 %v501_v13  ;;  %vm198_vm4 = vmand %vm195_vm2, %vm197_vm3  ;;  %v202_v54 = vld [vmem:[#allocation2] sm:$0x3] }
  0x41   :  { %438 = vmatpush3.bf16.msra.mxu0 %v534_v2  ;;  %503 = vmatprep.subr.bf16.mxu1 %v639_v6  ;;  %v402_v43 = vsel %vm198_vm4, 1.0, %v640_v7  ;;  %p612_p0 = pnand %p611_p13, %p605_p10 }
  0x42   :  { %439 = vmatprep.subr.bf16.mxu0 %v535_v4  ;;  %v201_v44 = vmul.f32 0.0625, %v402_v43 }
  0x44   :  { %505 = vmatpush3.bf16.msra.mxu1 %v504_v16 }
  0x45   :  { %440 = vmatpush3.bf16.msra.mxu0 %v535_v4  ;;  %506 = vmatprep.subr.bf16.mxu1 %v639_v6 }
  0x46   :  { %491 = vmatprep.subr.bf16.mxu0 %v639_v6 }
  0x48   :  { %442 = vmatmul.mubr.msk.bf16.vlgmr.msra.gmra.mrb[0].mxu0 %vm127_vm0, %v537_v5  ;;  %508 = vmatpush3.bf16.msra.mxu1 %v507_v19 }
  0x49   :  { %453 = vmatprep.mubr.msk.f32.mxu0 %vm641_vm1, %v640_v7  ;;  %509 = vmatprep.subr.bf16.mxu1 %v639_v6 }
  0x4c   :  { %511 = vmatpush3.bf16.msra.mxu1 %v510_v22 }
  0x4d   :  { %512 = vmatprep.subr.bf16.mxu1 %v639_v6 }
  0x50   :  { %514 = vmatpush3.bf16.msra.mxu1 %v513_v47 }
  0x51   :  { %515 = vmatprep.subr.bf16.mxu1 %v639_v6 }
  0x54   :  { %517 = vmatpush3.bf16.msra.mxu1 %v516_v50 }
  0x55   :  { %518 = vmatprep.subr.bf16.mxu1 %v639_v6 }
  0x58   :  { %520 = vmatpush3.bf16.msra.mxu1 %v519_v53 }
 0x11b   :  { %v443_v27 = vpop.f32.mrb[0].mxu0 }
 0x11c   :  { %v177_v30 = vadd.f32 %v443_v27, %v393_v26  ;;  %v168_v31 = vpop.f32.mrb[1].mxu0 }
 0x11d   :  { %v169_v32 = vadd.f32 %v393_v26, %v168_v31  ;;  %v444_v33 = vpop.f32.mrb[2].mxu0 }
 0x11e   :  { %v180_v34 = vadd.f32 %v444_v33, %v393_v26  ;;  %v171_v35 = vpop.f32.mrb[3].mxu0  ;;  %v185_v37 = vmax.f32 %v177_v30, 0.0 }
 0x11f   :  { %v172_v36 = vadd.f32 %v393_v26, %v171_v35  ;;  %v183_v39 = vmax.f32 %v169_v32, 0.0 }
 0x120   :  { %v186_v38 = vmax.f32 %v180_v34, 0.0 }
 0x121   :  { %v184_v40 = vmax.f32 %v172_v36, 0.0 }
 0x122   :  { %v495_v41 = vpack.c.bf16 %v186_v38, %v185_v37 }
 0x123   :  { %v492_v42 = vpack.c.bf16 %v184_v40, %v183_v39 }
 0x125   :  { %493 = vmatpush3.bf16.msra.mxu0 %v492_v42 }
 0x126   :  { %494 = vmatprep.subr.bf16.mxu0 %v639_v6 }
 0x129   :  { %496 = vmatpush3.bf16.msra.mxu0 %v495_v41 }
 0x12c   :  { %454 = vmatmul.mubr.msk.f32.vlgmr.msra.gmra.mrb[4].mxu0 %vm203_vm5, %v201_v44 }
 0x1ff   :  { %v273_v55 = vpop.f32.mrb[4].mxu0 }
 0x200   :  { %v277_v56 = vadd.f32 %v273_v55, %v202_v54  ;;  %v455_v57 = vpop.f32.mrb[5].mxu0 }
 0x202   :  { %278 = vst [vmem:[#allocation2] sm:$0x3] %v277_v56 }
 0x209   :  { %v282_v58 = vld [vmem:[#allocation2] sm:$0x3] }
 0x20a   :  { %489 = vmatmul.mubr.f32.vlgmr.msra.gmra.mrb[0].mxu1 %v282_v58 }
 0x2dd   :  { %v372_v60 = vpop.f32.mrb[0].mxu1 }
 0x2de   :  { %v373_v61 = vadd.f32 %v404_v59, %v372_v60  ;;  %v490_v62 = vpop.f32.mrb[1].mxu1 }
 0x2e0   :  { %376 = vst [vmem:[#allocation9] sm:$0x3] %v373_v61 }
 0x2e1   :  { %615 = shalt.err (!%p612_p0)
}
 0x2e2   :  { %s616_s13 = scalar_lea.hbm %s749_s5, 32 }
 0x2e3   :  { %p617_p1 = scmp.ne.s32.totalorder %s749_s5, %s616_s13  ;;  %p620_p2 = scmp.lt.u32.totalorder %s616_s13, %s749_s5 }
 0x2e5   :  { %p622_p3 = pnand %p620_p2, %p617_p1 }
 0x2e7   :  { %625 = shalt.err (!%p622_p3)
}
 0x2e8   :  { %386 = dma.vmem_to_hbm [thread:$0]  %s384_s9, 32, %s749_s5, [#allocation5]  }
 0x2e9   :  { %630 = dma.done.wait [#allocation5], 32  }
 0x2ea   :  { %631 = vsyncadd [#allocation5], 4294967264 }
 0x2eb   :  { %390 = vsyncpa [#allocation4], 1 }
 0x2ec   :  { %391 = vsyncpa [#allocation7], 1 }
 0x2ed   :  { %392 = vsyncpa [#allocation5], 1 }

</bundles_post_ra>
